<compile_context>
chip_gen: v7x
topology: tpu7x:2x2x1
jax: 0.10.0
libtpu: 0.0.40
codegen_flags: <defaults>
</compile_context>

<pallas_src>
import functools

import jax
import jax.numpy as jnp
from jax.experimental import pallas as pl
from jax.experimental.pallas import tpu as pltpu


def _channel_gate_kernel(x_ref, w1_ref, b1_ref, w2_ref, b2_ref, o_ref, *, inv_hw):
    """One batch element.

    x_ref : (1, C, HW)  input, spatial flattened onto the lane dim
    w1_ref: (Ch, C)     first Linear weight  (PyTorch layout: out_features x in_features)
    b1_ref: (Ch, 1)     first Linear bias (column)
    w2_ref: (C, Ch)     second Linear weight
    b2_ref: (C, 1)      second Linear bias (column)
    o_ref : (1, C, HW)  gated output
    """
    x = x_ref[0].astype(jnp.float32)                              # (C, HW)

    # Global average / max pooling over the spatial (lane) axis.
    avg = jnp.sum(x, axis=-1, keepdims=True) * inv_hw             # (C, 1)
    mx = jnp.max(x, axis=-1, keepdims=True)                       # (C, 1)
    pooled = jnp.concatenate([avg, mx], axis=-1)                  # (C, 2)

    w1 = w1_ref[...].astype(jnp.float32)                          # (Ch, C)
    b1 = b1_ref[...].astype(jnp.float32)                          # (Ch, 1)
    w2 = w2_ref[...].astype(jnp.float32)                          # (C, Ch)
    b2 = b2_ref[...].astype(jnp.float32)                          # (C, 1)

    # Shared MLP applied to both pooled vectors at once (as columns):
    #   h   = ReLU(W1 @ pooled + b1)        -> (Ch, 2)
    #   att = W2 @ h + b2                   -> (C, 2)
    h = jnp.dot(w1, pooled, preferred_element_type=jnp.float32) + b1
    h = jnp.maximum(h, 0.0)
    att = jnp.dot(w2, h, preferred_element_type=jnp.float32) + b2

    att_sum = att[:, 0:1] + att[:, 1:2]                           # (C, 1) avg + max
    scale = 1.0 / (1.0 + jnp.exp(-att_sum))                       # sigmoid, (C, 1)

    o_ref[...] = (x * scale)[None].astype(o_ref.dtype)            # lane-dense store


def channel_gate(x_nchw, params):
    """ChannelGate forward. x_nchw: (N, C, H, W); params in PyTorch Linear layout."""
    N, C, H, W = x_nchw.shape
    HW = H * W
    w1, b1 = params["w1"], params["b1"]          # (Ch, C), (Ch,)
    w2, b2 = params["w2"], params["b2"]          # (C, Ch), (C,)
    Ch = w1.shape[0]

    x3 = x_nchw.reshape(N, C, HW)                # contiguous merge: no data movement
    kernel = functools.partial(_channel_gate_kernel, inv_hw=1.0 / HW)

    cost = pl.CostEstimate(
        flops=4 * N * C * HW + 4 * N * C * Ch,                # pool + gate + tiny MLP
        transcendentals=N * C,                                # sigmoid exp
        bytes_accessed=(2 * N * C * HW + Ch * C + Ch + C * Ch + C) * 4,
    )

    out = pl.pallas_call(
        kernel,
        out_shape=jax.ShapeDtypeStruct((N, C, HW), x_nchw.dtype),
        grid=(N,),
        in_specs=[
            pl.BlockSpec((1, C, HW), lambda n: (n, 0, 0)),
            pl.BlockSpec((Ch, C), lambda n: (0, 0)),
            pl.BlockSpec((Ch, 1), lambda n: (0, 0)),
            pl.BlockSpec((C, Ch), lambda n: (0, 0)),
            pl.BlockSpec((C, 1), lambda n: (0, 0)),
        ],
        out_specs=pl.BlockSpec((1, C, HW), lambda n: (n, 0, 0)),
        compiler_params=pltpu.CompilerParams(dimension_semantics=("parallel",)),
        cost_estimate=cost,
    )(x3, w1, b1[:, None], w2, b2[:, None])

    return out.reshape(N, C, H, W)


def _reference(x, params):
    """Pure-JAX reference matching the PyTorch ChannelGate (avg + max pools)."""
    N, C, H, W = x.shape
    xf = x.reshape(N, C, H * W)
    avg = jnp.mean(xf, axis=2)                   # (N, C)
    mx = jnp.max(xf, axis=2)                     # (N, C)

    def mlp(p):
        h = jnp.maximum(p @ params["w1"].T + params["b1"], 0.0)
        return h @ params["w2"].T + params["b2"]

    att = mlp(avg) + mlp(mx)
    scale = jax.nn.sigmoid(att)[:, :, None, None]
    return x * scale


if __name__ == "__main__":
    key = jax.random.PRNGKey(0)
    k_x, k1, k2, k3, k4 = jax.random.split(key, 5)

    # gate_channels=32, reduction_ratio=16 (module default) -> hidden = 2.
    N, C, H, W = 2, 32, 16, 16
    reduction_ratio = 16
    Ch = C // reduction_ratio

    x = jax.random.normal(k_x, (N, C, H, W), jnp.float32)
    params = {
        "w1": 0.3 * jax.random.normal(k1, (Ch, C), jnp.float32),
        "b1": 0.1 * jax.random.normal(k2, (Ch,), jnp.float32),
        "w2": 0.3 * jax.random.normal(k3, (C, Ch), jnp.float32),
        "b2": 0.1 * jax.random.normal(k4, (C,), jnp.float32),
    }

    out = jax.block_until_ready(channel_gate(x, params))
    ref = jax.block_until_ready(_reference(x, params))

    assert out.shape == (N, C, H, W)
    err = jnp.max(jnp.abs(out - ref))
    assert err < 1e-4, f"max abs err {err}"

    print("KERNEL_OK")
</pallas_src>

<mosaic_0001>
module attributes {stable_mosaic.version = 11 : i64} {
  func.func @_channel_gate_kernel(%arg0: i32, %arg1: memref<1x32x256xf32, #tpu.memory_space<vmem>>, %arg2: memref<2x32xf32, #tpu.memory_space<vmem>>, %arg3: memref<2x1xf32, #tpu.memory_space<vmem>>, %arg4: memref<32x2xf32, #tpu.memory_space<vmem>>, %arg5: memref<32x1xf32, #tpu.memory_space<vmem>>, %arg6: memref<1x32x256xf32, #tpu.memory_space<vmem>>) attributes {dimension_semantics = [#tpu.dimension_semantics<parallel>], iteration_bounds = array<i64: 2>, scalar_prefetch = 0 : i64, scratch_operands = 0 : i64, tpu.core_type = #tpu.core_type<tc>, window_params = [{transform_indices = @transform_0, window_bounds = array<i64: 1, 32, 256>}, {pipeline_mode = #tpu.pipeline_mode<synchronous>, transform_indices = @transform_1, window_bounds = array<i64: 2, 32>}, {pipeline_mode = #tpu.pipeline_mode<synchronous>, transform_indices = @transform_2, window_bounds = array<i64: 2, 1>}, {pipeline_mode = #tpu.pipeline_mode<synchronous>, transform_indices = @transform_3, window_bounds = array<i64: 32, 2>}, {pipeline_mode = #tpu.pipeline_mode<synchronous>, transform_indices = @transform_4, window_bounds = array<i64: 32, 1>}, {transform_indices = @transform_5, window_bounds = array<i64: 1, 32, 256>}]} {
    %c0 = arith.constant 0 : index
    %c0_0 = arith.constant 0 : index
    %c0_1 = arith.constant 0 : index
    %0 = vector.load %arg1[%c0, %c0_0, %c0_1] : memref<1x32x256xf32, #tpu.memory_space<vmem>>, vector<1x32x256xf32>
    %1 = vector.shape_cast %0 : vector<1x32x256xf32> to vector<32x256xf32>
    %cst = arith.constant dense<0.000000e+00> : vector<32xf32>
    %2 = vector.multi_reduction <add>, %1, %cst [1] : vector<32x256xf32> to vector<32xf32>
    %3 = vector.shape_cast %2 : vector<32xf32> to vector<32x1xf32>
    %cst_2 = arith.constant 3.906250e-03 : f32
    %4 = vector.broadcast %cst_2 : f32 to vector<32x1xf32>
    %5 = arith.mulf %3, %4 : vector<32x1xf32>
    %cst_3 = arith.constant dense<0xFF800000> : vector<32xf32>
    %6 = vector.multi_reduction <maximumf>, %1, %cst_3 [1] : vector<32x256xf32> to vector<32xf32>
    %7 = vector.shape_cast %6 : vector<32xf32> to vector<32x1xf32>
    %8 = tpu.concatenate %5, %7 in 1 : vector<32x1xf32>, vector<32x1xf32> -> vector<32x2xf32>
    %c0_4 = arith.constant 0 : index
    %c0_5 = arith.constant 0 : index
    %9 = vector.load %arg2[%c0_4, %c0_5] : memref<2x32xf32, #tpu.memory_space<vmem>>, vector<2x32xf32>
    %c0_6 = arith.constant 0 : index
    %c0_7 = arith.constant 0 : index
    %10 = vector.load %arg3[%c0_6, %c0_7] : memref<2x1xf32, #tpu.memory_space<vmem>>, vector<2x1xf32>
    %c0_8 = arith.constant 0 : index
    %c0_9 = arith.constant 0 : index
    %11 = vector.load %arg4[%c0_8, %c0_9] : memref<32x2xf32, #tpu.memory_space<vmem>>, vector<32x2xf32>
    %c0_10 = arith.constant 0 : index
    %c0_11 = arith.constant 0 : index
    %12 = vector.load %arg5[%c0_10, %c0_11] : memref<32x1xf32, #tpu.memory_space<vmem>>, vector<32x1xf32>
    %cst_12 = arith.constant dense<0.000000e+00> : vector<2x2xf32>
    %13 = tpu.matmul %9, %8, %cst_12 {dimension_numbers = #tpu.dot_dimension_numbers<[1], [0], [0], [1], [0, 0, 1, 1], [], []>} : vector<2x32xf32>, vector<32x2xf32>, vector<2x2xf32> -> vector<2x2xf32>
    %14 = vector.broadcast %10 : vector<2x1xf32> to vector<2x2xf32>
    %15 = arith.addf %13, %14 : vector<2x2xf32>
    %cst_13 = arith.constant 0.000000e+00 : f32
    %16 = vector.broadcast %cst_13 : f32 to vector<2x2xf32>
    %17 = arith.maximumf %15, %16 : vector<2x2xf32>
    %cst_14 = arith.constant dense<0.000000e+00> : vector<32x2xf32>
    %18 = tpu.matmul %11, %17, %cst_14 {dimension_numbers = #tpu.dot_dimension_numbers<[1], [0], [0], [1], [0, 0, 1, 1], [], []>} : vector<32x2xf32>, vector<2x2xf32>, vector<32x2xf32> -> vector<32x2xf32>
    %19 = vector.broadcast %12 : vector<32x1xf32> to vector<32x2xf32>
    %20 = arith.addf %18, %19 : vector<32x2xf32>
    %21 = vector.extract_strided_slice %20 {offsets = [0, 0], sizes = [32, 1], strides = [1, 1]} : vector<32x2xf32> to vector<32x1xf32>
    %22 = vector.extract_strided_slice %20 {offsets = [0, 1], sizes = [32, 1], strides = [1, 1]} : vector<32x2xf32> to vector<32x1xf32>
    %23 = arith.addf %21, %22 : vector<32x1xf32>
    %cst_15 = arith.constant 0.000000e+00 : f32
    %24 = vector.broadcast %cst_15 : f32 to vector<32x1xf32>
    %25 = arith.subf %24, %23 : vector<32x1xf32>
    %26 = math.exp %25 : vector<32x1xf32>
    %cst_16 = arith.constant 1.000000e+00 : f32
    %27 = vector.broadcast %cst_16 : f32 to vector<32x1xf32>
    %28 = arith.addf %27, %26 : vector<32x1xf32>
    %cst_17 = arith.constant 1.000000e+00 : f32
    %29 = vector.broadcast %cst_17 : f32 to vector<32x1xf32>
    %30 = arith.divf %29, %28 : vector<32x1xf32>
    %31 = vector.broadcast %30 : vector<32x1xf32> to vector<32x256xf32>
    %32 = arith.mulf %1, %31 : vector<32x256xf32>
    %33 = vector.shape_cast %32 : vector<32x256xf32> to vector<1x32x256xf32>
    %c0_18 = arith.constant 0 : index
    %c0_19 = arith.constant 0 : index
    %c0_20 = arith.constant 0 : index
    %34 = vector.load %arg6[%c0_18, %c0_19, %c0_20] : memref<1x32x256xf32, #tpu.memory_space<vmem>>, vector<1x32x256xf32>
    tpu.vector_store %arg6[%c0_18, %c0_19, %c0_20], %33 {strides = array<i32>} : memref<1x32x256xf32, #tpu.memory_space<vmem>>, vector<1x32x256xf32>,
    return
  }
  func.func @transform_0(%arg0: i32) -> (i32, i32, i32) {
    %c0_i32 = arith.constant 0 : i32
    %c0_i32_0 = arith.constant 0 : i32
    %c0_i32_1 = arith.constant 0 : i32
    return %arg0, %c0_i32, %c0_i32_0 : i32, i32, i32
  }
  func.func @transform_1(%arg0: i32) -> (i32, i32) {
    %c0_i32 = arith.constant 0 : i32
    %c0_i32_0 = arith.constant 0 : i32
    %c0_i32_1 = arith.constant 0 : i32
    return %c0_i32, %c0_i32_0 : i32, i32
  }
  func.func @transform_2(%arg0: i32) -> (i32, i32) {
    %c0_i32 = arith.constant 0 : i32
    %c0_i32_0 = arith.constant 0 : i32
    %c0_i32_1 = arith.constant 0 : i32
    return %c0_i32, %c0_i32_0 : i32, i32
  }
  func.func @transform_3(%arg0: i32) -> (i32, i32) {
    %c0_i32 = arith.constant 0 : i32
    %c0_i32_0 = arith.constant 0 : i32
    %c0_i32_1 = arith.constant 0 : i32
    return %c0_i32, %c0_i32_0 : i32, i32
  }
  func.func @transform_4(%arg0: i32) -> (i32, i32) {
    %c0_i32 = arith.constant 0 : i32
    %c0_i32_0 = arith.constant 0 : i32
    %c0_i32_1 = arith.constant 0 : i32
    return %c0_i32, %c0_i32_0 : i32, i32
  }
  func.func @transform_5(%arg0: i32) -> (i32, i32, i32) {
    %c0_i32 = arith.constant 0 : i32
    %c0_i32_0 = arith.constant 0 : i32
    %c0_i32_1 = arith.constant 0 : i32
    return %arg0, %c0_i32, %c0_i32_0 : i32, i32, i32
  }
}

</mosaic_0001>

<bundles_post_ra>
// kernel: tpu_custom_call.1
= control target key start
LH: loop header
LB: loop body
LE: loop exit
PB: predicated region body
PF: predicated region fallthrough
CT: control target
= control target key end

     0   :  { %10 = vsyncpa [#allocation3], 0  ;;  %s1172_s0 = inlined_call_operand.hbm [shape: f32[2,32,256], index: 0, kind: input, shape index: {}]   ;;  %s1173_s1 = inlined_call_operand.vmem [shape: f32[2,32], index: 1, kind: input, shape index: {}]   ;;  %s1174_s2 = inlined_call_operand.vmem [shape: f32[2,1], index: 2, kind: input, shape index: {}]   ;;  %s1175_s3 = inlined_call_operand.vmem [shape: f32[32,2], index: 3, kind: input, shape index: {}]   ;;  %s1176_s4 = inlined_call_operand.vmem [shape: f32[32,1], index: 4, kind: input, shape index: {}]   ;;  %s1177_s5 = inlined_call_operand.hbm [shape: f32[2,32,256], index: 5, kind: output, shape index: {}]  }
   0x1   :  { %12 = vsyncpa [#allocation3 + $0x1], 0 }
   0x2   :  { %13 = vsyncpa [#allocation4], 0 }
   0x3   :  { %15 = vsyncpa [#allocation4 + $0x1], 0  ;;  %s932_s18 = smov 0   ;;  %s934_s19 = smov 0  }
   0x4   :  { %s936_s20 = smov 0   ;;  %s938_s21 = smov 0  }
   0x5 LB: > { %s953_s22 = sadd.s32 4294967295, %s889_s21   ;;  %s663_s23 = sadd.s32 4294967294, %s889_s21   ;;  %s889_s21 = sphi %s938_s21, %s1190_s21   ;;  %s885_s20 = sphi %s936_s20, %s1189_s20   ;;  %s881_s19 = sphi %s934_s19, %s1188_s19   ;;  %s877_s18 = sphi %s932_s18, %s1187_s18  }
   0x6   : > { %s957_s24 = sadd.s32 1, %s889_s21   ;;  %s28_s25 = sadd.s32 1, %s885_s20 }
   0x7   : > { %s25_s26 = ssub.s32 %s889_s21, %s957_s24  ;;  %p35_p0 = scmp.ne.s32.totalorder %s885_s20, %s881_s19 }
   0x8   : > { %p26_p1 = scmp.eq.s32.totalorder %s25_s26, 0  ;;  %p36_p2 = scmp.eq.s32.totalorder %s889_s21, 0 }
   0x9   : > { %p41_p3 = scmp.ne.s32.totalorder %s881_s19, %s877_s18  ;;  %p42_p4 = scmp.eq.s32.totalorder %s953_s22, 0 }
   0xa   : > { %s969_s27 = scalar_select %p26_p1, %s885_s20, %s28_s25  }
   0xb   : > { %p971_p5 = por %p36_p2, %p35_p0  ;;  %p975_p6 = por %p42_p4, %p41_p3 }
   0xc   : > { %p149_p7 = scmp.eq.s32.totalorder %s953_s22, 1  ;;  %p155_p8 = scmp.eq.s32.totalorder %s663_s23, 1 }
   0xd   : > { %p732_p10 = scmp.lt.s32.totalorder %s889_s21, 2  ;;  %s187_s7 = sand.u32 1, %s885_s20  }
   0xe   : > { %p982_p11 = por %p149_p7, %p35_p0  ;;  %p986_p12 = por %p155_p8, %p41_p3 }
   0xf   : > { %s683_s8 = sshll.u32 %s889_s21, 10  ;;  %s666_s9 = sshll.u32 %s187_s7, 6 }
  0x10   : > { %s1181_s30 = scalar_select %p982_p11, 1, 0 }
  0x11   : > { %s1182_s6 = scalar_select %p986_p12, 1, 0 }
  0x12   : > { %s995_s12 = scalar_lea.hbm %s1172_s0, %s683_s8  ;;  %s191_s13 = scalar_lea.vmem [#allocation2], %s666_s9 }
  0x13   : > { %s198_s14 = sshll.u32 %s191_s13, 4  ;;  %p999_p13 = pnand %p732_p10, %p971_p5  ;;  %s1003_s14 = int_to_ptr.vmem [resolvable:$true] %s198_s14 }
  0x14   : > { %s1005_s16 = scalar_lea.sflag [#allocation3], %s187_s7  ;;  %s793_s17 = scalar_lea.hbm %s995_s12, 1024 }
  0x15   : > { %p794_p0 = scmp.ne.s32.totalorder %s995_s12, %s793_s17  ;;  %p795_p1 = pneg %p999_p13 }
  0x16   : > { %s798_s26 = scalar_lea.hbm %s1172_s0, 2048  ;;  %p799_p4 = scmp.lt.u32.totalorder %s995_s12, %s1172_s0 }
  0x17   : > { %p796_p2 = pnand %p795_p1, %p794_p0  ;;  %p800_p5 = scmp.lt.u32.totalorder %s798_s26, %s793_s17 }
  0x18   : > { %p802_p8 = scmp.lt.u32.totalorder %s793_s17, %s995_s12 }
  0x19   : > { %p797_p3 = pneg %p796_p2  ;;  %p801_p7 = por %p800_p5, %p799_p4 }
  0x1b   : > { %p803_p10 = por %p802_p8, %p801_p7 }
  0x1d   : > { %p804_p9 = pnand %p803_p10, %p797_p3 }
  0x1f   : > { %807 = shalt.err (!%p804_p9)
}
  0x20   : > { %s808_s7 = scalar_lea.vmem %s1003_s14, 1024  ;;  %s891_s9 = smov [#allocation2]  }
  0x21   : > { %p809_p0 = scmp.ne.s32.totalorder %s1003_s14, %s808_s7  ;;  %s813_s10 = sshll.u32 %s891_s9, 4  ;;  %s814_s10 = int_to_ptr.vmem [resolvable:$false] %s813_s10 }
  0x22   : > { %s815_s11 = scalar_lea.vmem %s814_s10, 2048  ;;  %p816_p11 = scmp.lt.s32.totalorder %s1003_s14, %s814_s10 }
  0x23   : > { %p811_p2 = pnand %p809_p0, %p795_p1  ;;  %p817_p4 = scmp.lt.s32.totalorder %s815_s11, %s808_s7 }
  0x25   : > { %p812_p12 = pneg %p811_p2  ;;  %p818_p5 = por %p817_p4, %p816_p11 }
  0x27   : > { %p819_p7 = pnand %p818_p5, %p812_p12 }
  0x29   : > { %822 = shalt.err (!%p819_p7)
}
  0x2a   : > { %s892_s13 = smov 256   ;;  %s893_s17 = smov 16  }
  0x2b   : > { %727 = dma.hbm_to_vmem [thread:$0]  (!%p999_p13), %s995_s12, 1024, %s1003_s14, %s1005_s16, %s892_s13, %s892_s13, %s893_s17  }
  0x2c   : > { %p669_p9 = scmp.ge.s32.totalorder %s889_s21, 1  ;;  %p206_p1 = scmp.lt.s32.totalorder %s889_s21, 3 }
  0x2e   : > { %p207_p3 = pnand %p669_p9, %p206_p1 }
  0x2f   : > { %s1036_s23 = sand.u32 (!%p207_p3), 1, %s881_s19  }
  0x30   : > { %210 = sbr.rel (%p207_p3) target bundleno = 953 (0x3b9), region = 40  ;;  %s670_s25 = sshll.u32 (!%p207_p3), %s1036_s23, 6 }
  0x31   : > { %s213_s26 = scalar_lea.sflag (!%p207_p3), [#allocation3], %s1036_s23  ;;  %s216_s28 = scalar_lea.vmem (!%p207_p3), [#allocation2], %s670_s25 }
  0x37   : > { %868 = dma.done.wait (%p975_p6), %s213_s26, 1024  }
  0x38   : > { %870 = vsyncadd (%p975_p6), %s213_s26, 4294966272  ;;  %v1046_v0 = vld [vmem:[%s216_s28] sm:$0xff]  ;;  %v1048_v1 = vld [vmem:[%s216_s28 + $0x8] sm:$0xff]  ;;  %v894_v16 = vmov 0.0|0.0   ;;  %vm895_vm0 = vmmov 0   ;;  %v896_v17 = vmov 0.0  }
  0x39   : > { %v1050_v2 = vld [vmem:[%s216_s28 + $0x10] sm:$0xff]  ;;  %v267_v3 = vmax.f32 %v1046_v0, %v1048_v1  ;;  %v251_v4 = vadd.f32 %v1048_v1, %v1046_v0  ;;  %v1056_v5 = vld [vmem:[%s216_s28 + $0x18] sm:$0xff]  ;;  %v1066_v10 = vld [vmem:[%s216_s28 + $0x20] sm:$0xff]  ;;  %714 = vmatprep.subr.bf16.mxu0 %v894_v16  ;;  %703 = vmatprep.mubr.msk.f32.mxu0 %vm895_vm0, %v896_v17  ;;  %v897_v19 = vmov 0   ;;  %vm279_vm1 = vcmask 7168   ;;  %s898_s7 = smov 127  }
  0x3a   : > { %v270_v6 = vmax.f32 %v1050_v2, %v1056_v5  ;;  %v254_v7 = vadd.f32 %v1056_v5, %v1050_v2  ;;  %v1062_v8 = vld [vmem:[%s216_s28 + $0x30] sm:$0xff]  ;;  %v1064_v9 = vld [vmem:[%s216_s28 + $0x38] sm:$0xff]  ;;  %v1068_v11 = vld [vmem:[%s216_s28 + $0x28] sm:$0xff]  ;;  %775 = vset.pattern.permute.xlu0 %v897_v19  ;;  %776 = vset.pattern.permute.xlu1 %v897_v19  ;;  %vm299_vm2 = vcmask 261120   ;;  %vm394_vm3 = vcmask 15360   ;;  %s242_s9 = scalar_lea.vmem [#allocation5], %s670_s25 }
  0x3b   : > { %268 = vmax.xlane.f32.xlu1 %v267_v3  ;;  %252 = vadd.xlane.f32.xlu0 %v251_v4  ;;  %v260_v12 = vadd.f32 %v1064_v9, %v1062_v8  ;;  %v257_v13 = vadd.f32 %v1068_v11, %v1066_v10  ;;  %v276_v14 = vmax.f32 %v1062_v8, %v1064_v9  ;;  %v285_v18 = vld [vmem:[%s1174_s2] sm:$0x3]  ;;  %v291_v41 = vld [vmem:[%s1176_s4 + $0x8] sm:$0xff]  ;;  %v292_v42 = vld [vmem:[%s1176_s4 + $0x10] sm:$0xff]  ;;  %vm407_vm4 = vcmask 1041408   ;;  %s590_s10 = sshll.u32 %s242_s9, 4  ;;  %s1121_s10 = int_to_ptr.vmem [resolvable:$true] %s590_s10 }
  0x3c   : > { %v273_v15 = vmax.f32 %v1066_v10, %v1068_v11  ;;  %v284_v38 = vld [vmem:[%s1173_s1] sm:$0x3]  ;;  %v293_v43 = vld [vmem:[%s1176_s4 + $0x18] sm:$0xff]  ;;  %v287_v49 = vld [vmem:[%s1175_s3 + $0x8] sm:$0xff]  ;;  %s684_s11 = sshll.u32 %s953_s22, 10  ;;  %s577_s22 = scalar_lea.sflag [#allocation4], %s1036_s23 }
  0x3d   : > { %v286_v39 = vld [vmem:[%s1175_s3] sm:$0xff]  ;;  %v288_v50 = vld [vmem:[%s1175_s3 + $0x10] sm:$0xff]  ;;  %v289_v51 = vld [vmem:[%s1175_s3 + $0x18] sm:$0xff]  ;;  %s1126_s17 = scalar_lea.hbm %s1177_s5, %s684_s11  ;;  %s823_s26 = scalar_lea.vmem %s1121_s10, 1024 }
  0x3e   : > { %708 = vmatprep.mubr.msk.f32.mxu1 %vm394_vm3, %v286_v39  ;;  %v290_v40 = vld [vmem:[%s1176_s4] sm:$0xff]  ;;  %p824_p6 = scmp.ne.s32.totalorder %s1121_s10, %s823_s26  ;;  %p1184_p11 = scmp.ne.s32.totalorder %s1181_s30, 0 }
  0x3f   : > { %271 = vmax.xlane.f32.xlu1 %v270_v6  ;;  %255 = vadd.xlane.f32.xlu0 %v254_v7  ;;  %s899_s28 = smov [#allocation5]  }
  0x40   : > { %p825_p12 = pnand %p824_p6, %p1184_p11  ;;  %s827_s29 = sshll.u32 %s899_s28, 4  ;;  %s828_s29 = int_to_ptr.vmem [resolvable:$false] %s827_s29 }
  0x41   : > { %s829_s12 = scalar_lea.vmem %s828_s29, 2048  ;;  %p830_p8 = scmp.lt.s32.totalorder %s1121_s10, %s828_s29 }
  0x42   : > { %p826_p13 = pneg %p825_p12  ;;  %p831_p10 = scmp.lt.s32.totalorder %s829_s12, %s823_s26 }
  0x43   : > { %261 = vadd.xlane.f32.xlu1 %v260_v12  ;;  %258 = vadd.xlane.f32.xlu0 %v257_v13 }
  0x44   : > { %p832_p0 = por %p831_p10, %p830_p8 }
  0x46   : > { %p833_p2 = pnand %p832_p0, %p826_p13 }
  0x47   : > { %277 = vmax.xlane.f32.xlu1 %v276_v14  ;;  %274 = vmax.xlane.f32.xlu0 %v273_v15 }
  0x58   : > { %376 = vperm.xlu1 %776, %v290_v40  }
  0x5c   : > { %381 = vperm.xlu1 %776, %v291_v41  }
  0x5d   : > { %296 = vperm.xlu0 %775, %v285_v18  }
  0x60   : > { %386 = vperm.xlu1 %776, %v292_v42  }
  0x64   : > { %391 = vperm.xlu1 %776, %v293_v43  }
  0xc8   : > { %v269_v20 = vpop.xlane.xlu1 %268  ;;  %v253_v21 = vpop.xlane.xlu0 %252 }
  0xc9   : > { %v263_v22 = vmul.f32 0.00390625, %v253_v21 }
  0xcb   : > { %v280_v26 = vsel %vm279_vm1, %v263_v22, %v269_v20 }
  0xcc   : > { %v272_v23 = vpop.xlane.xlu1 %271  ;;  %v256_v24 = vpop.xlane.xlu0 %255 }
  0xcd   : > { %v264_v25 = vmul.f32 0.00390625, %v256_v24 }
  0xcf   : > { %v281_v27 = vsel %vm279_vm1, %v264_v25, %v272_v23 }
  0xd0   : > { %v262_v28 = vpop.xlane.xlu1 %261  ;;  %v259_v29 = vpop.xlane.xlu0 %258  ;;  %v715_v30 = vpack.c.bf16 %v281_v27, %v280_v26 }
  0xd1   : > { %v266_v31 = vmul.f32 0.00390625, %v262_v28  ;;  %v265_v32 = vmul.f32 0.00390625, %v259_v29 }
  0xd2   : > { %716 = vmatpush3.bf16.msra.mxu0 %v715_v30 }
  0xd3   : > { %717 = vmatprep.subr.bf16.mxu0 %v894_v16 }
  0xd4   : > { %v278_v33 = vpop.xlane.xlu1 %277  ;;  %v275_v34 = vpop.xlane.xlu0 %274 }
  0xd5   : > { %v283_v35 = vsel %vm279_vm1, %v266_v31, %v278_v33  ;;  %v282_v36 = vsel %vm279_vm1, %v265_v32, %v275_v34 }
  0xd6   : > { %v718_v37 = vpack.c.bf16 %v283_v35, %v282_v36 }
  0xd8   : > { %719 = vmatpush3.bf16.msra.mxu0 %v718_v37  ;;  %v377_v52 = vpop.permute.xlu1 %376 }
  0xdb   : > { %704 = vmatmul.mubr.msk.f32.vlgmr.msra.gmra.mrb[0].mxu0 %vm299_vm2, %v284_v38 }
  0xdc   : > { %v297_v44 = vpop.permute.xlu0 %296  ;;  %v382_v53 = vpop.permute.xlu1 %381 }
  0xe0   : > { %v387_v60 = vpop.permute.xlu1 %386 }
  0xe4   : > { %v392_v62 = vpop.permute.xlu1 %391 }
 0x1ae   : > { %v369_v45 = vpop.f32.mrb[0].mxu0 }
 0x1af   : > { %v370_v46 = vadd.f32 %v369_v45, %v297_v44  ;;  %v705_v47 = vpop.f32.mrb[1].mxu0 }
 0x1b1   : > { %v373_v48 = vmax.f32 %v370_v46, 0.0 }
 0x1b3   : > { %706 = vmatprep.subr.msk.mxu1 %vm407_vm4, %v373_v48 }
 0x1b4   : > { %707 = vmatpush3.msk.msra.mxu1 %vm407_vm4, %v373_v48 }
 0x1b5   : > { %709 = vmatmul.mubr.msk.f32.vlgmr.msra.gmra.mrb[0].mxu1 %vm394_vm3, %v287_v49 }
 0x1b6   : > { %711 = vmatprep.mubr.msk.f32.mxu1 %vm394_vm3, %v288_v50 }
 0x1b9   : > { %712 = vmatmul.mubr.msk.f32.gmra.mrb[2].mxu1 %vm394_vm3, %v289_v51 }
 0x288   : > { %v710_v54 = vpop.f32.mrb[0].mxu1 }
 0x289   : > { %v483_v55 = vadd.f32 %v710_v54, %v382_v53  ;;  %v477_v56 = vpop.f32.mrb[1].mxu1 }
 0x28a   : > { %v478_v58 = vadd.f32 %v477_v56, %v377_v52 }
 0x28b   : > { %502 = vrot.lane.b32.xlu1 %v483_v55, %s898_s7 }
 0x28c   : > { %v713_v57 = vpop.f32.mrb[2].mxu1 }
 0x28d   : > { %v487_v59 = vpop.f32.mrb[3].mxu1  ;;  %v493_v63 = vadd.f32 %v713_v57, %v392_v62 }
 0x28e   : > { %v488_v61 = vadd.f32 %v487_v59, %v387_v60 }
 0x28f   : > { %500 = vrot.lane.b32.xlu1 %v478_v58, %s898_s7 }
 0x293   : > { %504 = vrot.lane.b32.xlu1 %v488_v61, %s898_s7 }
 0x297   : > { %506 = vrot.lane.b32.xlu1 %v493_v63, %s898_s7 }
 0x2fd   : > { %v503_v3 = vpop.permute.xlu1 %502 }
 0x2fe   : > { %v513_v4 = vadd.f32 %v503_v3, %v483_v55 }
 0x300   : > { %v517_v6 = vsub.f32 0.0, %v513_v4 }
 0x301   : > { %v501_v7 = vpop.permute.xlu1 %500 }
 0x302   : > { %v522_v12 = vmul.f32 1.442695, %v517_v6  ;;  %v512_v13 = vadd.f32 %v501_v7, %v478_v58 }
 0x304   : > { %777 = vpow2.f32 %v522_v12  ;;  %v516_v14 = vsub.f32 0.0, %v512_v13 }
 0x305   : > { %v505_v15 = vpop.permute.xlu1 %504 }
 0x306   : > { %v520_v16 = vmul.f32 1.442695, %v516_v14  ;;  %v514_v17 = vadd.f32 %v505_v15, %v488_v61 }
 0x308   : > { %779 = vpow2.f32 %v520_v16  ;;  %v518_v18 = vsub.f32 0.0, %v514_v17 }
 0x309   : > { %v507_v19 = vpop.permute.xlu1 %506 }
 0x30a   : > { %v524_v20 = vmul.f32 1.442695, %v518_v18  ;;  %v515_v21 = vadd.f32 %v507_v19, %v493_v63 }
 0x30c   : > { %781 = vpow2.f32 %v524_v20  ;;  %v519_v22 = vsub.f32 0.0, %v515_v21 }
 0x30e   : > { %v778_v23 = vpop.eup %777  ;;  %v526_v24 = vmul.f32 1.442695, %v519_v22 }
 0x30f   : > { %v529_v25 = vadd.f32 1.0, %v778_v23 }
 0x310   : > { %783 = vpow2.f32 %v526_v24 }
 0x311   : > { %785 = vrcp.f32 %v529_v25 }
 0x312   : > { %v780_v26 = vpop.eup %779 }
 0x313   : > { %v528_v27 = vadd.f32 1.0, %v780_v26 }
 0x315   : > { %787 = vrcp.f32 %v528_v27 }
 0x316   : > { %v782_v28 = vpop.eup %781 }
 0x317   : > { %v530_v29 = vadd.f32 1.0, %v782_v28 }
 0x319   : > { %789 = vrcp.f32 %v530_v29 }
 0x31a   : > { %v784_v30 = vpop.eup %783 }
 0x31b   : > { %v786_v31 = vpop.eup %785  ;;  %v531_v32 = vadd.f32 1.0, %v784_v30 }
 0x31c   : > { %547 = vperm.xlu1 %776, %v786_v31  }
 0x31d   : > { %791 = vrcp.f32 %v531_v32 }
 0x31f   : > { %v788_v33 = vpop.eup %787 }
 0x320   : > { %542 = vperm.xlu0 %775, %v788_v33  }
 0x323   : > { %v790_v34 = vpop.eup %789 }
 0x324   : > { %552 = vperm.xlu0 %775, %v790_v34  }
 0x327   : > { %v792_v35 = vpop.eup %791 }
 0x328   : > { %557 = vperm.xlu1 %776, %v792_v35  }
 0x39b   : > { %v548_v36 = vpop.permute.xlu1 %547 }
 0x39c   : > { %v562_v37 = vmul.f32 %v548_v36, %v1050_v2  ;;  %v563_v38 = vmul.f32 %v548_v36, %v1056_v5 }
 0x39e   : > { %570 = vst [vmem:[%s242_s9 + $0x10] sm:$0xff] %v562_v37  ;;  %571 = vst [vmem:[%s242_s9 + $0x18] sm:$0xff] %v563_v38 }
 0x39f   : > { %v543_v39 = vpop.permute.xlu0 %542 }
 0x3a0   : > { %v560_v40 = vmul.f32 %v543_v39, %v1046_v0  ;;  %v561_v41 = vmul.f32 %v543_v39, %v1048_v1 }
 0x3a2   : > { %568 = vst [vmem:[%s242_s9] sm:$0xff] %v560_v40  ;;  %569 = vst [vmem:[%s242_s9 + $0x8] sm:$0xff] %v561_v41 }
 0x3a3   : > { %v553_v42 = vpop.permute.xlu0 %552 }
 0x3a4   : > { %v564_v43 = vmul.f32 %v553_v42, %v1066_v10  ;;  %v565_v2 = vmul.f32 %v553_v42, %v1068_v11 }
 0x3a6   : > { %572 = vst [vmem:[%s242_s9 + $0x20] sm:$0xff] %v564_v43  ;;  %573 = vst [vmem:[%s242_s9 + $0x28] sm:$0xff] %v565_v2 }
 0x3a7   : > { %v558_v0 = vpop.permute.xlu1 %557 }
 0x3a8   : > { %v566_v1 = vmul.f32 %v558_v0, %v1062_v8  ;;  %v567_v5 = vmul.f32 %v558_v0, %v1064_v9 }
 0x3aa   : > { %574 = vst [vmem:[%s242_s9 + $0x30] sm:$0xff] %v566_v1  ;;  %575 = vst [vmem:[%s242_s9 + $0x38] sm:$0xff] %v567_v5 }
 0x3ab   : > { %836 = shalt.err (!%p833_p2)
}
 0x3ac   : > { %s837_s14 = scalar_lea.hbm %s1126_s17, 1024  ;;  %s841_s8 = scalar_lea.hbm %s1177_s5, 2048 }
 0x3ad   : > { %p838_p4 = scmp.ne.s32.totalorder %s1126_s17, %s837_s14  ;;  %p842_p9 = scmp.lt.u32.totalorder %s1126_s17, %s1177_s5 }
 0x3ae   : > { %p843_p1 = scmp.lt.u32.totalorder %s841_s8, %s837_s14  ;;  %p845_p6 = scmp.lt.u32.totalorder %s837_s14, %s1126_s17 }
 0x3af   : > { %p839_p5 = pnand %p838_p4, %p1184_p11 }
 0x3b0   : > { %p844_p3 = por %p843_p1, %p842_p9 }
 0x3b1   : > { %p840_p7 = pneg %p839_p5 }
 0x3b2   : > { %p846_p12 = por %p845_p6, %p844_p3 }
 0x3b4   : > { %p847_p13 = pnand %p846_p12, %p840_p7 }
 0x3b6   : > { %850 = shalt.err (!%p847_p13)
}
 0x3b7   : > { %s900_s11 = smov 256   ;;  %s901_s25 = smov 16  }
 0x3b8   : > { %722 = dma.vmem_to_hbm [thread:$0]  (%p1184_p11), %s1121_s10, 1024, %s1126_s17, %s577_s22, %s900_s11, %s900_s11, %s901_s25  }
 0x3b9 PF: > { %s605_s13 = sand.u32 1, %s877_s18   ;;  %p1185_p8 = scmp.ne.s32.totalorder %s1182_s6, 0 }
 0x3ba   : > { %p1186_p10 = scmp.ge.s32.totalorder %s889_s21, 2  ;;  %s606_s26 = scalar_lea.sflag [#allocation4], %s605_s13 }
 0x3bc   : > { %p729_p0 = pnand %p1186_p10, %p1185_p8 }
 0x3be   : > { %872 = dma.done.wait (!%p729_p0), %s606_s26, 1024  }
 0x3bf   : > { %874 = vsyncadd (!%p729_p0), %s606_s26, 4294966272  ;;  %p18_p2 = scmp.ge.s32.totalorder %s957_s24, 4   ;;  %s1187_s18 = smov %s881_s19 }
 0x3c0   : > { %s1188_s19 = smov %s885_s20  ;;  %s1189_s20 = smov %s969_s27 }
 0x3c1   : > { %s1190_s21 = smov %s957_s24  ;;  %20 = sbr.rel (!%p18_p2) target bundleno = 5 (0x5), region = 85 }
 0x3c8   :  { %611 = vsyncpa [#allocation3], 1 }
 0x3c9   :  { %613 = vsyncpa [#allocation3 + $0x1], 1 }
 0x3ca   :  { %614 = vsyncpa [#allocation4], 1 }
 0x3cb   :  { %616 = vsyncpa [#allocation4 + $0x1], 1 }

</bundles_post_ra>
